<compile_context>
chip_gen: v6e
topology: v6e:2x2x1
jax: 0.10.0
libtpu: 0.0.40
codegen_flags: <defaults>
</compile_context>

<pallas_src>
import math

import jax
import jax.numpy as jnp
from jax import lax
from jax.experimental import pallas as pl
from jax.experimental.pallas import tpu as pltpu


# A (M, K) contracted with B (N, K) -> (M, N): transposed-RHS ("NT") matmul,
# handled natively by the Mosaic MXU lowering (same pattern as q @ k.T in the
# flash-attention kernels).
_NT_DIMS = (((1,), (1,)), ((), ()))


def _qfunc_kernel(obs_ref, act_ref, w1o_ref, w1a_ref, b1_ref,
                  w2_ref, b2_ref, w3_ref, b3_ref, out_ref):
    # Layer 1: W1 @ [obs; act]^T computed as two transposed-RHS matmuls on the
    # pre-split weight halves -> (h1, TB), batch on the lane axis.
    h = lax.dot_general(w1o_ref[...], obs_ref[...], _NT_DIMS,
                        preferred_element_type=jnp.float32)
    h = h + lax.dot_general(w1a_ref[...], act_ref[...], _NT_DIMS,
                            preferred_element_type=jnp.float32)
    h = jnp.maximum(h + b1_ref[...], 0.0)
    # Layer 2: (h2, h1) @ (h1, TB) -> (h2, TB)
    h = jnp.dot(w2_ref[...], h, preferred_element_type=jnp.float32)
    h = jnp.maximum(h + b2_ref[...], 0.0)
    # Output layer: scalar per batch column -> VPU multiply + sublane (XLU)
    # reduce; result is a lane-dense (1, TB) row -> unmasked full-lane stores.
    q = jnp.sum(h * w3_ref[...], axis=0, keepdims=True) + b3_ref[...]
    out_ref[...] = q.astype(out_ref.dtype)


def _resident_spec(arr):
    # Whole array, same block every grid step -> stays resident in VMEM.
    zeros = (0,) * arr.ndim
    return pl.BlockSpec(arr.shape, lambda i, _z=zeros: _z)


def _round_up(x, m):
    return m * pl.cdiv(x, m)


def mlp_qfunction_forward(obs, act, params, *, block_b=32768, min_tiles=2):
    """Q(obs, act) forward pass in one Pallas kernel.

    obs: (B, obs_dim) f32, act: (B, act_dim) f32
    params: dict with w1o (h1, obs_dim), w1a (h1, act_dim)  [PyTorch (out, in)
            layer-1 weight split by input half], b1 (h1, 1), w2 (h2, h1),
            b2 (h2, 1), w3 (h2, 1)  [PyTorch (1, h2) stored transposed],
            b3 (1, 1)
    returns: (B,) f32 -- q values, last dim squeezed like torch.squeeze(q, -1)
    """
    B, obs_dim = obs.shape
    act_dim = act.shape[1]

    # --- Batch tiling: 128-lane-aligned tiles, large enough to amortize the
    # per-grid-step overhead, and (when the batch allows) at least `min_tiles`
    # tiles so both v7x TensorCores get work via the "parallel" grid axis.
    B128 = _round_up(B, 128)
    TB = min(_round_up(block_b, 128), B128)
    if B128 >= min_tiles * 128:
        TB = min(TB, _round_up(pl.cdiv(B128, min_tiles), 128))
    num_tiles = pl.cdiv(B128, TB)
    TB = _round_up(pl.cdiv(B128, num_tiles), 128)   # rebalance -> less padding
    num_tiles = pl.cdiv(B128, TB)
    B_pad = num_tiles * TB

    # Only wrapper-side activation op left: pad batch to a lane multiple.
    # (Padded columns produce garbage q values; they are sliced off below.)
    if B_pad != B:
        pad = B_pad - B
        obs = jnp.pad(obs, ((0, pad), (0, 0)))
        act = jnp.pad(act, ((0, pad), (0, 0)))

    w1o, w1a = params["w1o"], params["w1a"]
    b1, w2, b2, w3, b3 = (params[k] for k in ("b1", "w2", "b2", "w3", "b3"))

    out = pl.pallas_call(
        _qfunc_kernel,
        out_shape=jax.ShapeDtypeStruct((1, B_pad), jnp.float32),
        grid=(num_tiles,),
        in_specs=[
            # Streamed activations (natural layout, no host-side transpose).
            # If profiling ever shows the DMA exposed, add
            # pipeline_mode=pl.Buffered(3) on these two specs only.
            pl.BlockSpec((TB, obs_dim), lambda i: (i, 0)),
            pl.BlockSpec((TB, act_dim), lambda i: (i, 0)),
            # VMEM-resident weights/biases (constant index maps).
            _resident_spec(w1o), _resident_spec(w1a), _resident_spec(b1),
            _resident_spec(w2), _resident_spec(b2),
            _resident_spec(w3), _resident_spec(b3),
        ],
        out_specs=pl.BlockSpec((1, TB), lambda i: (0, i)),  # lane-dense q row
        compiler_params=pltpu.CompilerParams(
            dimension_semantics=("parallel",),
            vmem_limit_bytes=48 * 1024 * 1024,
        ),
    )(obs, act, w1o, w1a, b1, w2, b2, w3, b3)

    return out[0, :B]


def init_params(key, obs_dim, act_dim, hidden_sizes):
    """PyTorch nn.Linear default init (uniform +/- 1/sqrt(fan_in)).

    Weights are kept in PyTorch (out_features, in_features) layout; the
    layer-1 weight is pre-split into obs/act halves once here (so the kernel
    never needs a concat), and biases are stored as columns so they broadcast
    over the lane (batch) axis in-kernel.
    """
    h1, h2 = hidden_sizes
    in_dim = obs_dim + act_dim
    keys = jax.random.split(key, 6)

    def uinit(k, shape, fan_in):
        bound = 1.0 / math.sqrt(fan_in)
        return jax.random.uniform(k, shape, jnp.float32, -bound, bound)

    w1 = uinit(keys[0], (h1, in_dim), in_dim)
    return {
        "w1o": w1[:, :obs_dim],              # (h1, obs_dim)
        "w1a": w1[:, obs_dim:],              # (h1, act_dim)
        "b1": uinit(keys[1], (h1, 1), in_dim),
        "w2": uinit(keys[2], (h2, h1), h1),
        "b2": uinit(keys[3], (h2, 1), h1),
        "w3": uinit(keys[4], (h2, 1), h2),   # PyTorch (1, h2) transposed
        "b3": uinit(keys[5], (1, 1), h2),
    }


def _reference_forward(obs, act, params):
    """Pure-JAX f32 reference matching the PyTorch module."""
    x = jnp.concatenate([obs, act], axis=-1)
    w1 = jnp.concatenate([params["w1o"], params["w1a"]], axis=1)
    h = jnp.maximum(x @ w1.T + params["b1"][:, 0], 0.0)
    h = jnp.maximum(h @ params["w2"].T + params["b2"][:, 0], 0.0)
    q = h @ params["w3"] + params["b3"][0]
    return jnp.squeeze(q, -1)


if __name__ == "__main__":
    # Shapes consistent with the module: obs_dim=12, act_dim=4,
    # hidden_sizes=(32, 32), activation=ReLU.
    OBS_DIM, ACT_DIM = 12, 4
    HIDDEN = (32, 32)

    key = jax.random.PRNGKey(0)
    k_obs, k_act, k_params, k_obs2, k_act2 = jax.random.split(key, 5)
    params = init_params(k_params, OBS_DIM, ACT_DIM, HIDDEN)

    # Test 1: tiny batch (single 128-padded tile).
    B1 = 8
    obs1 = jax.random.normal(k_obs, (B1, OBS_DIM), dtype=jnp.float32)
    act1 = jax.random.normal(k_act, (B1, ACT_DIM), dtype=jnp.float32)
    q1 = jax.block_until_ready(mlp_qfunction_forward(obs1, act1, params))
    q1_ref = _reference_forward(obs1, act1, params)
    assert q1.shape == (B1,)
    assert jnp.allclose(q1, q1_ref, atol=2e-2, rtol=2e-2)

    # Test 2: non-multiple-of-128 batch exercising the multi-tile grid path.
    B2 = 300
    obs2 = jax.random.normal(k_obs2, (B2, OBS_DIM), dtype=jnp.float32)
    act2 = jax.random.normal(k_act2, (B2, ACT_DIM), dtype=jnp.float32)
    q2 = jax.block_until_ready(mlp_qfunction_forward(obs2, act2, params))
    q2_ref = _reference_forward(obs2, act2, params)
    assert q2.shape == (B2,)
    assert jnp.allclose(q2, q2_ref, atol=2e-2, rtol=2e-2)

    print("KERNEL_OK")
</pallas_src>

<mosaic_0001>
module attributes {stable_mosaic.version = 11 : i64} {
  func.func @_qfunc_kernel(%arg0: i32, %arg1: memref<128x12xf32, #tpu.memory_space<vmem>>, %arg2: memref<128x4xf32, #tpu.memory_space<vmem>>, %arg3: memref<32x12xf32, #tpu.memory_space<vmem>>, %arg4: memref<32x4xf32, #tpu.memory_space<vmem>>, %arg5: memref<32x1xf32, #tpu.memory_space<vmem>>, %arg6: memref<32x32xf32, #tpu.memory_space<vmem>>, %arg7: memref<32x1xf32, #tpu.memory_space<vmem>>, %arg8: memref<32x1xf32, #tpu.memory_space<vmem>>, %arg9: memref<1x1xf32, #tpu.memory_space<vmem>>, %arg10: memref<1x128xf32, #tpu.memory_space<vmem>>) attributes {dimension_semantics = [#tpu.dimension_semantics<parallel>], iteration_bounds = array<i64: 1>, scalar_prefetch = 0 : i64, scratch_operands = 0 : i64, tpu.core_type = #tpu.core_type<tc>, window_params = [{transform_indices = @transform_0, window_bounds = array<i64: 128, 12>}, {transform_indices = @transform_1, window_bounds = array<i64: 128, 4>}, {pipeline_mode = #tpu.pipeline_mode<synchronous>, transform_indices = @transform_2, window_bounds = array<i64: 32, 12>}, {pipeline_mode = #tpu.pipeline_mode<synchronous>, transform_indices = @transform_3, window_bounds = array<i64: 32, 4>}, {pipeline_mode = #tpu.pipeline_mode<synchronous>, transform_indices = @transform_4, window_bounds = array<i64: 32, 1>}, {pipeline_mode = #tpu.pipeline_mode<synchronous>, transform_indices = @transform_5, window_bounds = array<i64: 32, 32>}, {pipeline_mode = #tpu.pipeline_mode<synchronous>, transform_indices = @transform_6, window_bounds = array<i64: 32, 1>}, {pipeline_mode = #tpu.pipeline_mode<synchronous>, transform_indices = @transform_7, window_bounds = array<i64: 32, 1>}, {pipeline_mode = #tpu.pipeline_mode<synchronous>, transform_indices = @transform_8, window_bounds = array<i64: 1, 1>}, {transform_indices = @transform_9, window_bounds = array<i64: 1, 128>}]} {
    %c0 = arith.constant 0 : index
    %c0_0 = arith.constant 0 : index
    %0 = vector.load %arg3[%c0, %c0_0] : memref<32x12xf32, #tpu.memory_space<vmem>>, vector<32x12xf32>
    %c0_1 = arith.constant 0 : index
    %c0_2 = arith.constant 0 : index
    %1 = vector.load %arg1[%c0_1, %c0_2] : memref<128x12xf32, #tpu.memory_space<vmem>>, vector<128x12xf32>
    %cst = arith.constant dense<0.000000e+00> : vector<32x128xf32>
    %2 = tpu.matmul %0, %1, %cst {dimension_numbers = #tpu.dot_dimension_numbers<[1], [1], [0], [0], [0, 0, 1, 0], [], []>} : vector<32x12xf32>, vector<128x12xf32>, vector<32x128xf32> -> vector<32x128xf32>
    %c0_3 = arith.constant 0 : index
    %c0_4 = arith.constant 0 : index
    %3 = vector.load %arg4[%c0_3, %c0_4] : memref<32x4xf32, #tpu.memory_space<vmem>>, vector<32x4xf32>
    %c0_5 = arith.constant 0 : index
    %c0_6 = arith.constant 0 : index
    %4 = vector.load %arg2[%c0_5, %c0_6] : memref<128x4xf32, #tpu.memory_space<vmem>>, vector<128x4xf32>
    %cst_7 = arith.constant dense<0.000000e+00> : vector<32x128xf32>
    %5 = tpu.matmul %3, %4, %cst_7 {dimension_numbers = #tpu.dot_dimension_numbers<[1], [1], [0], [0], [0, 0, 1, 0], [], []>} : vector<32x4xf32>, vector<128x4xf32>, vector<32x128xf32> -> vector<32x128xf32>
    %6 = arith.addf %2, %5 : vector<32x128xf32>
    %c0_8 = arith.constant 0 : index
    %c0_9 = arith.constant 0 : index
    %7 = vector.load %arg5[%c0_8, %c0_9] : memref<32x1xf32, #tpu.memory_space<vmem>>, vector<32x1xf32>
    %8 = vector.broadcast %7 : vector<32x1xf32> to vector<32x128xf32>
    %9 = arith.addf %6, %8 : vector<32x128xf32>
    %cst_10 = arith.constant 0.000000e+00 : f32
    %10 = vector.broadcast %cst_10 : f32 to vector<32x128xf32>
    %11 = arith.maximumf %9, %10 : vector<32x128xf32>
    %c0_11 = arith.constant 0 : index
    %c0_12 = arith.constant 0 : index
    %12 = vector.load %arg6[%c0_11, %c0_12] : memref<32x32xf32, #tpu.memory_space<vmem>>, vector<32x32xf32>
    %cst_13 = arith.constant dense<0.000000e+00> : vector<32x128xf32>
    %13 = tpu.matmul %12, %11, %cst_13 {dimension_numbers = #tpu.dot_dimension_numbers<[1], [0], [0], [1], [0, 0, 1, 1], [], []>} : vector<32x32xf32>, vector<32x128xf32>, vector<32x128xf32> -> vector<32x128xf32>
    %c0_14 = arith.constant 0 : index
    %c0_15 = arith.constant 0 : index
    %14 = vector.load %arg7[%c0_14, %c0_15] : memref<32x1xf32, #tpu.memory_space<vmem>>, vector<32x1xf32>
    %15 = vector.broadcast %14 : vector<32x1xf32> to vector<32x128xf32>
    %16 = arith.addf %13, %15 : vector<32x128xf32>
    %cst_16 = arith.constant 0.000000e+00 : f32
    %17 = vector.broadcast %cst_16 : f32 to vector<32x128xf32>
    %18 = arith.maximumf %16, %17 : vector<32x128xf32>
    %c0_17 = arith.constant 0 : index
    %c0_18 = arith.constant 0 : index
    %19 = vector.load %arg8[%c0_17, %c0_18] : memref<32x1xf32, #tpu.memory_space<vmem>>, vector<32x1xf32>
    %20 = vector.broadcast %19 : vector<32x1xf32> to vector<32x128xf32>
    %21 = arith.mulf %18, %20 : vector<32x128xf32>
    %cst_19 = arith.constant dense<0.000000e+00> : vector<128xf32>
    %22 = vector.multi_reduction <add>, %21, %cst_19 [0] : vector<32x128xf32> to vector<128xf32>
    %23 = vector.shape_cast %22 : vector<128xf32> to vector<1x128xf32>
    %c0_20 = arith.constant 0 : index
    %c0_21 = arith.constant 0 : index
    %24 = vector.load %arg9[%c0_20, %c0_21] : memref<1x1xf32, #tpu.memory_space<vmem>>, vector<1x1xf32>
    %25 = vector.broadcast %24 : vector<1x1xf32> to vector<1x128xf32>
    %26 = arith.addf %23, %25 : vector<1x128xf32>
    %c0_22 = arith.constant 0 : index
    %c0_23 = arith.constant 0 : index
    %27 = vector.load %arg10[%c0_22, %c0_23] : memref<1x128xf32, #tpu.memory_space<vmem>>, vector<1x128xf32>
    tpu.vector_store %arg10[%c0_22, %c0_23], %26 {strides = array<i32>} : memref<1x128xf32, #tpu.memory_space<vmem>>, vector<1x128xf32>,
    return
  }
  func.func @transform_0(%arg0: i32) -> (i32, i32) {
    %c0_i32 = arith.constant 0 : i32
    %c0_i32_0 = arith.constant 0 : i32
    return %arg0, %c0_i32 : i32, i32
  }
  func.func @transform_1(%arg0: i32) -> (i32, i32) {
    %c0_i32 = arith.constant 0 : i32
    %c0_i32_0 = arith.constant 0 : i32
    return %arg0, %c0_i32 : i32, i32
  }
  func.func @transform_2(%arg0: i32) -> (i32, i32) {
    %c0_i32 = arith.constant 0 : i32
    %c0_i32_0 = arith.constant 0 : i32
    %c0_i32_1 = arith.constant 0 : i32
    return %c0_i32, %c0_i32_0 : i32, i32
  }
  func.func @transform_3(%arg0: i32) -> (i32, i32) {
    %c0_i32 = arith.constant 0 : i32
    %c0_i32_0 = arith.constant 0 : i32
    %c0_i32_1 = arith.constant 0 : i32
    return %c0_i32, %c0_i32_0 : i32, i32
  }
  func.func @transform_4(%arg0: i32) -> (i32, i32) {
    %c0_i32 = arith.constant 0 : i32
    %c0_i32_0 = arith.constant 0 : i32
    %c0_i32_1 = arith.constant 0 : i32
    return %c0_i32, %c0_i32_0 : i32, i32
  }
  func.func @transform_5(%arg0: i32) -> (i32, i32) {
    %c0_i32 = arith.constant 0 : i32
    %c0_i32_0 = arith.constant 0 : i32
    %c0_i32_1 = arith.constant 0 : i32
    return %c0_i32, %c0_i32_0 : i32, i32
  }
  func.func @transform_6(%arg0: i32) -> (i32, i32) {
    %c0_i32 = arith.constant 0 : i32
    %c0_i32_0 = arith.constant 0 : i32
    %c0_i32_1 = arith.constant 0 : i32
    return %c0_i32, %c0_i32_0 : i32, i32
  }
  func.func @transform_7(%arg0: i32) -> (i32, i32) {
    %c0_i32 = arith.constant 0 : i32
    %c0_i32_0 = arith.constant 0 : i32
    %c0_i32_1 = arith.constant 0 : i32
    return %c0_i32, %c0_i32_0 : i32, i32
  }
  func.func @transform_8(%arg0: i32) -> (i32, i32) {
    %c0_i32 = arith.constant 0 : i32
    %c0_i32_0 = arith.constant 0 : i32
    %c0_i32_1 = arith.constant 0 : i32
    return %c0_i32, %c0_i32_0 : i32, i32
  }
  func.func @transform_9(%arg0: i32) -> (i32, i32) {
    %c0_i32 = arith.constant 0 : i32
    %c0_i32_0 = arith.constant 0 : i32
    return %c0_i32, %arg0 : i32, i32
  }
}

</mosaic_0001>

<bundles_post_ra>
// kernel: tpu_custom_call.1
= control target key start
LH: loop header
LB: loop body
LE: loop exit
PB: predicated region body
PF: predicated region fallthrough
CT: control target
= control target key end

     0   :  { %s1110_s0 = inlined_call_operand.vmem [shape: f32[128,12], index: 0, kind: input, shape index: {}]   ;;  %s1111_s1 = inlined_call_operand.vmem [shape: f32[128,4], index: 1, kind: input, shape index: {}]   ;;  %s1112_s2 = inlined_call_operand.vmem [shape: f32[32,12], index: 2, kind: input, shape index: {}]   ;;  %s1113_s3 = inlined_call_operand.vmem [shape: f32[32,4], index: 3, kind: input, shape index: {}]   ;;  %s1114_s4 = inlined_call_operand.vmem [shape: f32[32,1], index: 4, kind: input, shape index: {}]   ;;  %s1115_s5 = inlined_call_operand.vmem [shape: f32[32,32], index: 5, kind: input, shape index: {}]   ;;  %s1116_s6 = inlined_call_operand.vmem [shape: f32[32,1], index: 6, kind: input, shape index: {}]   ;;  %s1117_s7 = inlined_call_operand.vmem [shape: f32[32,1], index: 7, kind: input, shape index: {}]   ;;  %s1118_s8 = inlined_call_operand.<no memory space> [shape: f32[1,1], index: 8, kind: input, shape index: {}]   ;;  %s1119_s9 = inlined_call_operand.hbm [shape: f32[1,128], index: 9, kind: output, shape index: {}]  }
   0x1   :  { %v14_v0 = vstv %s1118_s8 }
   0x2   :  { %15 = vst [vmem:[#allocation2] sm:$0x1] %v14_v0 }
   0x3   :  { %v74_v1 = vld [vmem:[%s1111_s1 + $0x78] sm:$0xff]  ;;  %vm75_vm0 = vcmask 31744   ;;  %vm221_vm1 = vcmask 97280   ;;  %v73_v3 = vld [vmem:[%s1111_s1 + $0x70] sm:$0xff]  ;;  %v72_v5 = vld [vmem:[%s1111_s1 + $0x68] sm:$0xff]  ;;  %v808_v7 = vmov 0  }
   0x4   :  { %v54_v2 = vld [vmem:[%s1110_s0 + $0x78] sm:$0xff]  ;;  %684 = vmatprep.subr.msk.mxu0 %vm75_vm0, %v74_v1  ;;  %v53_v4 = vld [vmem:[%s1110_s0 + $0x70] sm:$0xff]  ;;  %v52_v6 = vld [vmem:[%s1110_s0 + $0x68] sm:$0xff]  ;;  %784 = vset.pattern.permute.xlu0 %v808_v7 }
   0x5   :  { %722 = vmatprep.subr.msk.mxu1 %vm221_vm1, %v54_v2  ;;  %685 = vmatpush3.xpose.msk.msra.mxu0 %vm75_vm0, %v74_v1  ;;  %v71_v8 = vld [vmem:[%s1111_s1 + $0x60] sm:$0xff]  ;;  %v70_v12 = vld [vmem:[%s1111_s1 + $0x58] sm:$0xff]  ;;  %v368_v15 = vld [vmem:[%s1114_s4 + $0x8] sm:$0xff] }
   0x6   :  { %723 = vmatpush3.xpose.msk.msra.mxu1 %vm221_vm1, %v54_v2  ;;  %686 = vmatprep.subr.msk.mxu0 %vm75_vm0, %v73_v3  ;;  %v51_v9 = vld [vmem:[%s1110_s0 + $0x60] sm:$0xff]  ;;  %v50_v13 = vld [vmem:[%s1110_s0 + $0x58] sm:$0xff]  ;;  %v69_v16 = vld [vmem:[%s1111_s1 + $0x50] sm:$0xff] }
   0x7   :  { %724 = vmatprep.subr.msk.mxu1 %vm221_vm1, %v53_v4  ;;  %785 = vset.pattern.permute.xlu1 %v808_v7  ;;  %v55_v10 = vld [vmem:[%s1113_s3] sm:$0xff]  ;;  %v370_v14 = vld [vmem:[%s1114_s4 + $0x18] sm:$0xff]  ;;  %v49_v17 = vld [vmem:[%s1110_s0 + $0x50] sm:$0xff] }
   0x8   :  { %v35_v11 = vld [vmem:[%s1112_s2] sm:$0xff]  ;;  %716 = vmatprep.mubr.msk.f32.mxu0 %vm75_vm0, %v55_v10  ;;  %388 = vperm.xlu0 %784, %v370_v14   ;;  %v369_v18 = vld [vmem:[%s1114_s4 + $0x10] sm:$0xff] }
   0x9   :  { %687 = vmatpush3.xpose.msk.msra.mxu0 %vm75_vm0, %v73_v3  ;;  %754 = vmatprep.mubr.msk.f32.mxu1 %vm221_vm1, %v35_v11  ;;  %v367_v19 = vld [vmem:[%s1114_s4] sm:$0xff] }
   0xa   :  { %725 = vmatpush3.xpose.msk.msra.mxu1 %vm221_vm1, %v53_v4  ;;  %688 = vmatprep.subr.msk.mxu0 %vm75_vm0, %v72_v5 }
   0xb   :  { %726 = vmatprep.subr.msk.mxu1 %vm221_vm1, %v52_v6  ;;  %378 = vperm.xlu1 %785, %v368_v15  }
   0xd   :  { %689 = vmatpush3.xpose.msk.msra.mxu0 %vm75_vm0, %v72_v5 }
   0xe   :  { %727 = vmatpush3.xpose.msk.msra.mxu1 %vm221_vm1, %v52_v6  ;;  %690 = vmatprep.subr.msk.mxu0 %vm75_vm0, %v71_v8 }
   0xf   :  { %728 = vmatprep.subr.msk.mxu1 %vm221_vm1, %v51_v9 }
  0x11   :  { %691 = vmatpush3.xpose.msk.msra.mxu0 %vm75_vm0, %v71_v8 }
  0x12   :  { %729 = vmatpush3.xpose.msk.msra.mxu1 %vm221_vm1, %v51_v9  ;;  %692 = vmatprep.subr.msk.mxu0 %vm75_vm0, %v70_v12 }
  0x13   :  { %730 = vmatprep.subr.msk.mxu1 %vm221_vm1, %v50_v13 }
  0x14   :  { %16 = vsyncpa [#allocation4], 0  ;;  %v68_v20 = vld [vmem:[%s1111_s1 + $0x48] sm:$0xff]  ;;  %383 = vperm.xlu0 %784, %v369_v18   ;;  %373 = vperm.xlu1 %785, %v367_v19   ;;  %v403_v22 = vld [vmem:[%s1116_s6] sm:$0xff]  ;;  %vm427_vm2 = vcmask 261120  }
  0x15   :  { %693 = vmatpush3.xpose.msk.msra.mxu0 %vm75_vm0, %v70_v12  ;;  %v48_v21 = vld [vmem:[%s1110_s0 + $0x48] sm:$0xff]  ;;  %v67_v24 = vld [vmem:[%s1111_s1 + $0x40] sm:$0xff]  ;;  %v405_v26 = vld [vmem:[%s1116_s6 + $0x10] sm:$0xff] }
  0x16   :  { %731 = vmatpush3.xpose.msk.msra.mxu1 %vm221_vm1, %v50_v13  ;;  %694 = vmatprep.subr.msk.mxu0 %vm75_vm0, %v69_v16  ;;  %v404_v23 = vld [vmem:[%s1116_s6 + $0x8] sm:$0xff]  ;;  %v47_v25 = vld [vmem:[%s1110_s0 + $0x40] sm:$0xff]  ;;  %v406_v27 = vld [vmem:[%s1116_s6 + $0x18] sm:$0xff] }
  0x17   :  { %732 = vmatprep.subr.msk.mxu1 %vm221_vm1, %v49_v17  ;;  %v66_v28 = vld [vmem:[%s1111_s1 + $0x38] sm:$0xff]  ;;  %v529_v30 = vld [vmem:[%s1117_s7] sm:$0xff]  ;;  %v530_v31 = vld [vmem:[%s1117_s7 + $0x8] sm:$0xff] }
  0x18   :  { %409 = vperm.xlu0 %784, %v403_v22   ;;  %414 = vperm.xlu1 %785, %v404_v23   ;;  %v46_v29 = vld [vmem:[%s1110_s0 + $0x38] sm:$0xff]  ;;  %v65_v32 = vld [vmem:[%s1111_s1 + $0x30] sm:$0xff]  ;;  %v64_v36 = vld [vmem:[%s1111_s1 + $0x28] sm:$0xff] }
  0x19   :  { %695 = vmatpush3.xpose.msk.msra.mxu0 %vm75_vm0, %v69_v16  ;;  %v45_v33 = vld [vmem:[%s1110_s0 + $0x30] sm:$0xff]  ;;  %v532_v35 = vld [vmem:[%s1117_s7 + $0x18] sm:$0xff]  ;;  %v44_v37 = vld [vmem:[%s1110_s0 + $0x28] sm:$0xff] }
  0x1a   :  { %733 = vmatpush3.xpose.msk.msra.mxu1 %vm221_vm1, %v49_v17  ;;  %696 = vmatprep.subr.msk.mxu0 %vm75_vm0, %v68_v20  ;;  %v531_v34 = vld [vmem:[%s1117_s7 + $0x10] sm:$0xff]  ;;  %v566_v38 = vld [vmem:[#allocation2] sm:$0x1]  ;;  %v62_v41 = vld [vmem:[%s1111_s1 + $0x18] sm:$0xff] }
  0x1b   :  { %734 = vmatprep.subr.msk.mxu1 %vm221_vm1, %v48_v21  ;;  %v63_v39 = vld [vmem:[%s1111_s1 + $0x20] sm:$0xff]  ;;  %v42_v42 = vld [vmem:[%s1110_s0 + $0x18] sm:$0xff]  ;;  %v61_v43 = vld [vmem:[%s1111_s1 + $0x10] sm:$0xff] }
  0x1c   :  { %419 = vperm.xlu0 %784, %v405_v26   ;;  %424 = vperm.xlu1 %785, %v406_v27   ;;  %v43_v40 = vld [vmem:[%s1110_s0 + $0x20] sm:$0xff]  ;;  %v41_v44 = vld [vmem:[%s1110_s0 + $0x10] sm:$0xff]  ;;  %v60_v45 = vld [vmem:[%s1111_s1 + $0x8] sm:$0xff] }
  0x1d   :  { %697 = vmatpush3.xpose.msk.msra.mxu0 %vm75_vm0, %v68_v20  ;;  %v40_v46 = vld [vmem:[%s1110_s0 + $0x8] sm:$0xff]  ;;  %v59_v47 = vld [vmem:[%s1111_s1] sm:$0xff]  ;;  %v57_v51 = vld [vmem:[%s1113_s3 + $0x10] sm:$0xff] }
  0x1e   :  { %735 = vmatpush3.xpose.msk.msra.mxu1 %vm221_vm1, %v48_v21  ;;  %698 = vmatprep.subr.msk.mxu0 %vm75_vm0, %v67_v24  ;;  %v39_v48 = vld [vmem:[%s1110_s0] sm:$0xff]  ;;  %v56_v49 = vld [vmem:[%s1113_s3 + $0x8] sm:$0xff]  ;;  %v37_v52 = vld [vmem:[%s1112_s2 + $0x10] sm:$0xff] }
  0x1f   :  { %736 = vmatprep.subr.msk.mxu1 %vm221_vm1, %v47_v25  ;;  %v36_v50 = vld [vmem:[%s1112_s2 + $0x8] sm:$0xff]  ;;  %v58_v53 = vld [vmem:[%s1113_s3 + $0x18] sm:$0xff]  ;;  %v399_v55 = vld [vmem:[%s1115_s5] sm:$0xff] }
  0x20   :  { %535 = vperm.xlu0 %784, %v529_v30   ;;  %540 = vperm.xlu1 %785, %v530_v31   ;;  %v38_v54 = vld [vmem:[%s1112_s2 + $0x18] sm:$0xff]  ;;  %v401_v56 = vld [vmem:[%s1115_s5 + $0x10] sm:$0xff]  ;;  %v400_v17 = vld [vmem:[%s1115_s5 + $0x8] sm:$0xff] }
  0x21   :  { %699 = vmatpush3.xpose.msk.msra.mxu0 %vm75_vm0, %v67_v24  ;;  %v402_v18 = vld [vmem:[%s1115_s5 + $0x18] sm:$0xff]  ;;  %s809_s5 = smov [#allocation3]  }
  0x22   :  { %737 = vmatpush3.xpose.msk.msra.mxu1 %vm221_vm1, %v47_v25  ;;  %700 = vmatprep.subr.msk.mxu0 %vm75_vm0, %v66_v28  ;;  %s584_s22 = sshll.u32 %s809_s5, 4  ;;  %s585_s22 = int_to_ptr.vmem [resolvable:$true] %s584_s22 }
  0x23   :  { %738 = vmatprep.subr.msk.mxu1 %vm221_vm1, %v46_v29  ;;  %s786_s23 = scalar_lea.vmem %s585_s22, 16  ;;  %s790_s24 = scalar_lea.vmem %s585_s22, 32 }
  0x24   :  { %545 = vperm.xlu0 %784, %v531_v34   ;;  %550 = vperm.xlu1 %785, %v532_v35   ;;  %p787_p0 = scmp.ne.s32.totalorder %s585_s22, %s786_s23  ;;  %p791_p1 = scmp.lt.s32.totalorder %s585_s22, %s585_s22 }
  0x25   :  { %701 = vmatpush3.xpose.msk.msra.mxu0 %vm75_vm0, %v66_v28  ;;  %p792_p2 = scmp.lt.s32.totalorder %s790_s24, %s786_s23 }
  0x26   :  { %739 = vmatpush3.xpose.msk.msra.mxu1 %vm221_vm1, %v46_v29  ;;  %702 = vmatprep.subr.msk.mxu0 %vm75_vm0, %v65_v32 }
  0x27   :  { %740 = vmatprep.subr.msk.mxu1 %vm221_vm1, %v45_v33  ;;  %p793_p3 = por %p792_p2, %p791_p1 }
  0x28   :  { %569 = vperm.xlu0 %784, %v566_v38  }
  0x29   :  { %703 = vmatpush3.xpose.msk.msra.mxu0 %vm75_vm0, %v65_v32  ;;  %p794_p4 = pnand %p793_p3, %p787_p0 }
  0x2a   :  { %741 = vmatpush3.xpose.msk.msra.mxu1 %vm221_vm1, %v45_v33  ;;  %704 = vmatprep.subr.msk.mxu0 %vm75_vm0, %v64_v36 }
  0x2b   :  { %742 = vmatprep.subr.msk.mxu1 %vm221_vm1, %v44_v37 }
  0x2d   :  { %705 = vmatpush3.xpose.msk.msra.mxu0 %vm75_vm0, %v64_v36 }
  0x2e   :  { %743 = vmatpush3.xpose.msk.msra.mxu1 %vm221_vm1, %v44_v37  ;;  %706 = vmatprep.subr.msk.mxu0 %vm75_vm0, %v63_v39 }
  0x2f   :  { %744 = vmatprep.subr.msk.mxu1 %vm221_vm1, %v43_v40 }
  0x31   :  { %707 = vmatpush3.xpose.msk.msra.mxu0 %vm75_vm0, %v63_v39 }
  0x32   :  { %745 = vmatpush3.xpose.msk.msra.mxu1 %vm221_vm1, %v43_v40  ;;  %708 = vmatprep.subr.msk.mxu0 %vm75_vm0, %v62_v41 }
  0x33   :  { %746 = vmatprep.subr.msk.mxu1 %vm221_vm1, %v42_v42 }
  0x35   :  { %709 = vmatpush3.xpose.msk.msra.mxu0 %vm75_vm0, %v62_v41 }
  0x36   :  { %747 = vmatpush3.xpose.msk.msra.mxu1 %vm221_vm1, %v42_v42  ;;  %710 = vmatprep.subr.msk.mxu0 %vm75_vm0, %v61_v43 }
  0x37   :  { %748 = vmatprep.subr.msk.mxu1 %vm221_vm1, %v41_v44 }
  0x39   :  { %711 = vmatpush3.xpose.msk.msra.mxu0 %vm75_vm0, %v61_v43 }
  0x3a   :  { %749 = vmatpush3.xpose.msk.msra.mxu1 %vm221_vm1, %v41_v44  ;;  %712 = vmatprep.subr.msk.mxu0 %vm75_vm0, %v60_v45 }
  0x3b   :  { %750 = vmatprep.subr.msk.mxu1 %vm221_vm1, %v40_v46 }
  0x3d   :  { %713 = vmatpush3.xpose.msk.msra.mxu0 %vm75_vm0, %v60_v45  ;;  %v572_v45 = vlaneseq }
  0x3e   :  { %751 = vmatpush3.xpose.msk.msra.mxu1 %vm221_vm1, %v40_v46  ;;  %714 = vmatprep.subr.msk.mxu0 %vm75_vm0, %v59_v47 }
  0x3f   :  { %752 = vmatprep.subr.msk.mxu1 %vm221_vm1, %v39_v48 }
  0x41   :  { %715 = vmatpush3.xpose.msk.msra.mxu0 %vm75_vm0, %v59_v47 }
  0x42   :  { %753 = vmatpush3.xpose.msk.msra.mxu1 %vm221_vm1, %v39_v48  ;;  %v573_v48 = vshrl.u32 %v572_v45, 7 }
  0x44   :  { %717 = vmatmul.mubr.msk.f32.vlgmr.msra.gmra.mxu0 %vm75_vm0, %v56_v49 }
  0x45   :  { %755 = vmatmul.mubr.msk.f32.vlgmr.msra.gmra.mxu1 %vm221_vm1, %v36_v50  ;;  %719 = vmatprep.mubr.msk.f32.mxu0 %vm75_vm0, %v57_v51  ;;  %v574_v51 = vsub.s32 0, %v573_v48 }
  0x46   :  { %757 = vmatprep.mubr.msk.f32.mxu1 %vm221_vm1, %v37_v52 }
  0x48   :  { %720 = vmatmul.mubr.msk.f32.gmra.mxu0 %vm75_vm0, %v58_v53 }
  0x49   :  { %758 = vmatmul.mubr.msk.f32.gmra.mxu1 %vm221_vm1, %v38_v54  ;;  %768 = vmatprep.mubr.msk.f32.mxu0 %vm427_vm2, %v399_v55 }
  0x4a   :  { %771 = vmatprep.mubr.msk.f32.mxu1 %vm427_vm2, %v401_v56 }
  0x83   :  { %v389_v59 = vpop.permute.xlu0 %388 }
  0x86   :  { %v379_v62 = vpop.permute.xlu1 %378 }
  0x8f   :  { %v384_v8 = vpop.permute.xlu0 %383  ;;  %v374_v12 = vpop.permute.xlu1 %373 }
  0x93   :  { %v410_v19 = vpop.permute.xlu0 %409  ;;  %v415_v20 = vpop.permute.xlu1 %414 }
  0x97   :  { %v420_v21 = vpop.permute.xlu0 %419  ;;  %v425_v22 = vpop.permute.xlu1 %424 }
  0x9b   :  { %v536_v25 = vpop.permute.xlu0 %535  ;;  %v541_v33 = vpop.permute.xlu1 %540 }
  0x9f   :  { %v546_v39 = vpop.permute.xlu0 %545  ;;  %v551_v42 = vpop.permute.xlu1 %550 }
  0xa3   :  { %v570_v53 = vpop.permute.xlu0 %569 }
  0xa4   :  { %v575_v55 = vrot.slane %v570_v53, %v574_v51 }
 0x104   :  { %v718_v57 = vpop.f32.mrf.mxu0 }
 0x105   :  { %v756_v58 = vpop.f32.mrf.mxu1 }
 0x106   :  { %v202_v60 = vpop.f32.mrf.mxu0  ;;  %v354_v1 = vadd.f32 %v756_v58, %v718_v57 }
 0x107   :  { %v348_v61 = vpop.f32.mrf.mxu1 }
 0x108   :  { %v721_v63 = vpop.f32.mrf.mxu0  ;;  %v349_v5 = vadd.f32 %v348_v61, %v202_v60  ;;  %v392_v9 = vadd.f32 %v379_v62, %v354_v1 }
 0x109   :  { %v759_v0 = vpop.f32.mrf.mxu1 }
 0x10a   :  { %v364_v2 = vadd.f32 %v759_v0, %v721_v63  ;;  %v212_v3 = vpop.f32.mrf.mxu0  ;;  %v391_v13 = vadd.f32 %v374_v12, %v349_v5  ;;  %v396_v15 = vmax.f32 %v392_v9, 0.0 }
 0x10b   :  { %v358_v4 = vpop.f32.mrf.mxu1 }
 0x10c   :  { %v394_v6 = vadd.f32 %v389_v59, %v364_v2  ;;  %v359_v7 = vadd.f32 %v358_v4, %v212_v3  ;;  %v395_v16 = vmax.f32 %v391_v13, 0.0 }
 0x10e   :  { %v398_v10 = vmax.f32 %v394_v6, 0.0  ;;  %v393_v11 = vadd.f32 %v384_v8, %v359_v7 }
 0x110   :  { %v397_v14 = vmax.f32 %v393_v11, 0.0  ;;  %760 = vmatprep.subr.mxu0 %v398_v10  ;;  %774 = vmatprep.subr.mxu1 %v398_v10 }
 0x111   :  { %761 = vmatpush3.msra.mxu0 %v398_v10  ;;  %778 = vmatpush3.msra.mxu1 %v398_v10 }
 0x112   :  { %762 = vmatprep.subr.mxu0 %v397_v14  ;;  %775 = vmatprep.subr.mxu1 %v397_v14 }
 0x113   :  { %763 = vmatpush3.msra.mxu0 %v397_v14  ;;  %779 = vmatpush3.msra.mxu1 %v397_v14 }
 0x114   :  { %764 = vmatprep.subr.mxu0 %v396_v15  ;;  %776 = vmatprep.subr.mxu1 %v396_v15 }
 0x115   :  { %765 = vmatpush3.msra.mxu0 %v396_v15  ;;  %780 = vmatpush3.msra.mxu1 %v396_v15 }
 0x116   :  { %766 = vmatprep.subr.mxu0 %v395_v16  ;;  %777 = vmatprep.subr.mxu1 %v395_v16 }
 0x117   :  { %767 = vmatpush3.msra.mxu0 %v395_v16  ;;  %781 = vmatpush3.msra.mxu1 %v395_v16 }
 0x118   :  { %769 = vmatmul.mubr.msk.f32.vlgmr.msra.gmra.mxu0 %vm427_vm2, %v400_v17  ;;  %772 = vmatmul.mubr.msk.f32.vlgmr.msra.gmra.mxu1 %vm427_vm2, %v402_v18 }
 0x1d8   :  { %v770_v23 = vpop.f32.mrf.mxu0  ;;  %v773_v24 = vpop.f32.mrf.mxu1 }
 0x1d9   :  { %v512_v26 = vadd.f32 %v770_v23, %v415_v20  ;;  %v522_v30 = vadd.f32 %v773_v24, %v425_v22 }
 0x1da   :  { %v506_v27 = vpop.f32.mrf.mxu0  ;;  %v516_v28 = vpop.f32.mrf.mxu1 }
 0x1db   :  { %v526_v29 = vmax.f32 %v512_v26, 0.0  ;;  %v507_v31 = vadd.f32 %v506_v27, %v410_v19  ;;  %v517_v32 = vadd.f32 %v516_v28, %v420_v21  ;;  %v528_v37 = vmax.f32 %v522_v30, 0.0 }
 0x1dd   :  { %v525_v34 = vmax.f32 %v507_v31, 0.0  ;;  %v527_v35 = vmax.f32 %v517_v32, 0.0  ;;  %v554_v36 = vmul.f32 %v541_v33, %v526_v29  ;;  %v556_v43 = vmul.f32 %v551_v42, %v528_v37 }
 0x1df   :  { %v553_v38 = vmul.f32 %v536_v25, %v525_v34  ;;  %v555_v41 = vmul.f32 %v546_v39, %v527_v35 }
 0x1e1   :  { %v557_v40 = vadd.f32 %v554_v36, %v553_v38 }
 0x1e3   :  { %v558_v44 = vadd.f32 %v557_v40, %v555_v41 }
 0x1e5   :  { %v559_v46 = vadd.f32 %v558_v44, %v556_v43 }
 0x1e7   :  { %v560_v47 = vrot.slane %v559_v46, 4 }
 0x1e9   :  { %v561_v49 = vadd.f32 %v560_v47, %v559_v46 }
 0x1eb   :  { %v562_v50 = vrot.slane %v561_v49, 2 }
 0x1ed   :  { %v563_v52 = vadd.f32 %v562_v50, %v561_v49 }
 0x1ef   :  { %v564_v54 = vrot.slane %v563_v52, 1 }
 0x1f1   :  { %v565_v56 = vadd.f32 %v564_v54, %v563_v52 }
 0x1f3   :  { %v576_v57 = vadd.f32 %v575_v55, %v565_v56 }
 0x1f5   :  { %577 = vst [vmem:[#allocation3] sm:$0x1] %v576_v57 }
 0x1f6   :  { %797 = shalt.err (!%p794_p4)
}
 0x1f7   :  { %587 = dma.vmem_to_hbm [thread:$0]  %s585_s22, 16, %s1119_s9, [#allocation4]  }
 0x1f8   :  { %806 = dma.done.wait [#allocation4], 16  }
 0x1f9   :  { %807 = vsyncadd [#allocation4], 4294967280 }
 0x1fa   :  { %591 = vsyncpa [#allocation4], 1 }

</bundles_post_ra>
